<compile_context>
chip_gen: v5e
topology: v5e:2x2
jax: 0.10.0
libtpu: 0.0.40
codegen_flags: <defaults>
</compile_context>

<pallas_src>
import functools

import jax
import jax.numpy as jnp
from jax import lax
from jax.experimental import pallas as pl
from jax.experimental.pallas import tpu as pltpu


def _round_up(x, m):
    return ((x + m - 1) // m) * m


def _vmem_capacity_bytes():
    """Physical VMEM per TensorCore; conservative 64 MiB fallback (v7x)."""
    try:
        return int(pltpu.get_tpu_info().vmem_capacity_bytes)
    except Exception:
        return 64 * 1024 * 1024


def _patch_embed_kernel(x_ref, w_ref, b_ref, o_ref):
    # x_ref: (TM, K_pad)  w_ref: (K_pad, N)  b_ref: (1, N) f32  o_ref: (TM, N)
    acc = jnp.dot(x_ref[...], w_ref[...], preferred_element_type=jnp.float32)
    o_ref[...] = (acc + b_ref[...]).astype(o_ref.dtype)


def _choose_tile_m(M, K_pad, N, in_bytes, out_bytes, vmem_capacity):
    """M-tile fitting ~45% of physical VMEM, counting double-buffered A/O
    tiles, the f32 matmul accumulator, and the (double-buffered) resident
    weight/bias.  Also shrinks TM so the grid has >=4 steps for megacore
    balance on multi-TensorCore chips."""
    budget = int(0.45 * vmem_capacity)
    # Resident operands (weight + bias); counted double-buffered since we do
    # not use pl.Buffered(1) (the second buffer is allocated even though the
    # grid-invariant copy is only issued once).
    resident = 2 * K_pad * N * in_bytes + 2 * N * 4
    # Per output row: double-buffered A tile + double-buffered O tile + f32 acc.
    per_row = 2 * K_pad * in_bytes + 2 * N * out_bytes + N * 4
    avail = max(budget - resident, per_row * 8)
    tm = avail // per_row
    if tm >= 256:
        tm = (tm // 256) * 256           # full MXU passes when the tile is big
    else:
        tm = max((tm // 8) * 8, 8)       # sublane granularity otherwise
    tm = min(tm, 2048)

    # Megacore balance: aim for >= 4 grid steps (v7x has 2 TCs per chip).
    bal_align = 128 if M >= 512 else 8
    tm_bal = _round_up(-(-M // 4), bal_align)
    tm = min(tm, max(tm_bal, 8))

    # Never larger than the (sublane-rounded) row count.
    tm = min(tm, _round_up(M, 8))
    return int(max(tm, 8))


def patch_embed_matmul(patches, weight, bias, *, out_dtype):
    """patches: (M, K), weight: (K, N), bias: (1, N) f32 -> (M, N) out_dtype."""
    M, K = patches.shape
    K2, N = weight.shape
    assert K == K2 and bias.shape == (1, N)

    in_bytes = jnp.dtype(patches.dtype).itemsize
    out_bytes = jnp.dtype(out_dtype).itemsize

    # Only the contraction dim needs zero padding (exactness); it fuses into
    # the im2col producer.  M is handled by ragged-tile masking, N stays as
    # the full last dim of every block (no output slice / no masked-K math).
    K_pad = _round_up(K, 128)
    if K_pad != K:
        patches = jnp.pad(patches, ((0, 0), (0, K_pad - K)))
        weight = jnp.pad(weight, ((0, K_pad - K), (0, 0)))

    capacity = _vmem_capacity_bytes()
    TM = _choose_tile_m(M, K_pad, N, in_bytes, out_bytes, capacity)
    grid = (pl.cdiv(M, TM),)

    resident = 2 * K_pad * N * in_bytes + 2 * N * 4
    per_row = 2 * K_pad * in_bytes + 2 * N * out_bytes + N * 4
    vmem_usage = resident + TM * per_row + (2 << 20)   # + Mosaic scratch margin
    vmem_limit = int(min(max(32 << 20, int(1.2 * vmem_usage)),
                         int(0.9 * capacity)))

    cost = pl.CostEstimate(
        flops=2 * M * K_pad * N,
        transcendentals=0,
        bytes_accessed=(M * K_pad * in_bytes + K_pad * N * in_bytes
                        + M * N * out_bytes + N * 4),
    )

    out = pl.pallas_call(
        _patch_embed_kernel,
        out_shape=jax.ShapeDtypeStruct((M, N), out_dtype),
        grid=grid,
        in_specs=[
            pl.BlockSpec((TM, K_pad), lambda i: (i, 0)),   # streamed patch rows
            pl.BlockSpec((K_pad, N), lambda i: (0, 0)),    # resident weight
            pl.BlockSpec((1, N), lambda i: (0, 0)),        # resident bias (f32)
        ],
        out_specs=pl.BlockSpec((TM, N), lambda i: (i, 0)),
        compiler_params=pltpu.CompilerParams(
            dimension_semantics=("parallel",),   # megacore split across M tiles
            vmem_limit_bytes=vmem_limit,
        ),
        cost_estimate=cost,
    )(patches, weight, bias)
    return out


@functools.partial(jax.jit,
                   static_argnames=("patch_size", "compute_dtype", "out_dtype"))
def patch_embeddings_forward(x, conv_weight, conv_bias, *, patch_size,
                             compute_dtype=jnp.bfloat16, out_dtype=None):
    """Equivalent of PatchEmbeddings.forward.

    x           : (B, C, H, W)  NCHW, same as the PyTorch module.
    conv_weight : (hidden_dim, C, P, P)  PyTorch Conv2d weight layout.
    conv_bias   : (hidden_dim,)
    returns     : (B, (H//P)*(W//P), hidden_dim) in out_dtype (default x.dtype;
                  bf16 operands, f32 accumulation).
    """
    B, C, H, W = x.shape
    P = patch_size
    hidden_dim = conv_weight.shape[0]
    assert H % P == 0 and W % P == 0
    hp, wp = H // P, W // P
    num_patches = hp * wp
    out_dtype = x.dtype if out_dtype is None else jnp.dtype(out_dtype)

    # Cast to the narrow compute dtype BEFORE the im2col rearrangement so the
    # materialized patch tensor costs half the HBM traffic (cast fuses with
    # the transpose producer).
    xc = x.astype(compute_dtype)
    patches = xc.reshape(B, C, hp, P, wp, P)
    patches = patches.transpose(0, 2, 4, 1, 3, 5)            # (B, hp, wp, C, P, P)
    patches = patches.reshape(B * num_patches, C * P * P)    # (M, K), K = (c,ph,pw)

    # (hidden_dim, C, P, P) -> (C*P*P, hidden_dim): same (c,ph,pw) K ordering.
    w2d = conv_weight.reshape(hidden_dim, C * P * P).T.astype(compute_dtype)
    b2d = conv_bias.reshape(1, hidden_dim).astype(jnp.float32)

    out = patch_embed_matmul(patches, w2d, b2d, out_dtype=out_dtype)
    return out.reshape(B, num_patches, hidden_dim)


if __name__ == "__main__":
    # Small shapes: batch=2, channels=4, spatial=16x16, patch=4, hidden=32
    B, C, H, W = 2, 4, 16, 16
    P = 4
    hidden_dim = 32

    key = jax.random.PRNGKey(0)
    kx, kw, kb = jax.random.split(key, 3)

    x = jax.random.normal(kx, (B, C, H, W), dtype=jnp.float32)
    fan_in = C * P * P
    bound = 1.0 / (fan_in ** 0.5)
    conv_weight = jax.random.uniform(kw, (hidden_dim, C, P, P),
                                     minval=-bound, maxval=bound,
                                     dtype=jnp.float32)
    conv_bias = jax.random.uniform(kb, (hidden_dim,),
                                   minval=-bound, maxval=bound,
                                   dtype=jnp.float32)

    out = patch_embeddings_forward(x, conv_weight, conv_bias, patch_size=P)
    out = jax.block_until_ready(out)

    # Reference: strided conv + rearrange. Inputs quantized to the same bf16
    # compute dtype so the comparison tolerance stays tight (kernel uses bf16
    # operands with f32 accumulation).
    xq = x.astype(jnp.bfloat16).astype(jnp.float32)
    wq = conv_weight.astype(jnp.bfloat16).astype(jnp.float32)
    ref = lax.conv_general_dilated(
        xq, wq, window_strides=(P, P), padding="VALID",
        dimension_numbers=("NCHW", "OIHW", "NCHW"),
        preferred_element_type=jnp.float32)
    ref = ref + conv_bias[None, :, None, None]
    ref = ref.reshape(B, hidden_dim, -1).transpose(0, 2, 1)  # b c h w -> b (h w) c

    assert out.shape == (B, (H // P) * (W // P), hidden_dim)
    assert out.dtype == jnp.float32
    max_err = float(jnp.max(jnp.abs(out - ref)))
    assert jnp.allclose(out, ref, atol=5e-3, rtol=5e-3), max_err

    print("KERNEL_OK")
</pallas_src>

<mosaic_0001>
module attributes {stable_mosaic.version = 11 : i64} {
  func.func @_patch_embed_kernel(%arg0: i32, %arg1: memref<8x128xbf16, #tpu.memory_space<vmem>>, %arg2: memref<128x32xbf16, #tpu.memory_space<vmem>>, %arg3: memref<1x32xf32, #tpu.memory_space<vmem>>, %arg4: memref<8x32xf32, #tpu.memory_space<vmem>>) attributes {dimension_semantics = [#tpu.dimension_semantics<parallel>], iteration_bounds = array<i64: 4>, scalar_prefetch = 0 : i64, scratch_operands = 0 : i64, tpu.core_type = #tpu.core_type<tc>, window_params = [{transform_indices = @transform_0, window_bounds = array<i64: 8, 128>}, {pipeline_mode = #tpu.pipeline_mode<synchronous>, transform_indices = @transform_1, window_bounds = array<i64: 128, 32>}, {pipeline_mode = #tpu.pipeline_mode<synchronous>, transform_indices = @transform_2, window_bounds = array<i64: 1, 32>}, {transform_indices = @transform_3, window_bounds = array<i64: 8, 32>}]} {
    %c0 = arith.constant 0 : index
    %c0_0 = arith.constant 0 : index
    %0 = vector.load %arg1[%c0, %c0_0] : memref<8x128xbf16, #tpu.memory_space<vmem>>, vector<8x128xbf16>
    %c0_1 = arith.constant 0 : index
    %c0_2 = arith.constant 0 : index
    %1 = vector.load %arg2[%c0_1, %c0_2] : memref<128x32xbf16, #tpu.memory_space<vmem>>, vector<128x32xbf16>
    %cst = arith.constant dense<0.000000e+00> : vector<8x32xf32>
    %2 = tpu.matmul %0, %1, %cst {dimension_numbers = #tpu.dot_dimension_numbers<[1], [0], [0], [1], [0, 0, 1, 1], [], []>} : vector<8x128xbf16>, vector<128x32xbf16>, vector<8x32xf32> -> vector<8x32xf32>
    %c0_3 = arith.constant 0 : index
    %c0_4 = arith.constant 0 : index
    %3 = vector.load %arg3[%c0_3, %c0_4] : memref<1x32xf32, #tpu.memory_space<vmem>>, vector<1x32xf32>
    %4 = vector.broadcast %3 : vector<1x32xf32> to vector<8x32xf32>
    %5 = arith.addf %2, %4 : vector<8x32xf32>
    %c0_5 = arith.constant 0 : index
    %c0_6 = arith.constant 0 : index
    %6 = vector.load %arg4[%c0_5, %c0_6] : memref<8x32xf32, #tpu.memory_space<vmem>>, vector<8x32xf32>
    tpu.vector_store %arg4[%c0_5, %c0_6], %5 {strides = array<i32>} : memref<8x32xf32, #tpu.memory_space<vmem>>, vector<8x32xf32>,
    return
  }
  func.func @transform_0(%arg0: i32) -> (i32, i32) {
    %c0_i32 = arith.constant 0 : i32
    %c0_i32_0 = arith.constant 0 : i32
    return %arg0, %c0_i32 : i32, i32
  }
  func.func @transform_1(%arg0: i32) -> (i32, i32) {
    %c0_i32 = arith.constant 0 : i32
    %c0_i32_0 = arith.constant 0 : i32
    %c0_i32_1 = arith.constant 0 : i32
    return %c0_i32, %c0_i32_0 : i32, i32
  }
  func.func @transform_2(%arg0: i32) -> (i32, i32) {
    %c0_i32 = arith.constant 0 : i32
    %c0_i32_0 = arith.constant 0 : i32
    %c0_i32_1 = arith.constant 0 : i32
    return %c0_i32, %c0_i32_0 : i32, i32
  }
  func.func @transform_3(%arg0: i32) -> (i32, i32) {
    %c0_i32 = arith.constant 0 : i32
    %c0_i32_0 = arith.constant 0 : i32
    return %arg0, %c0_i32 : i32, i32
  }
}

</mosaic_0001>

<bundles_post_ra>
// kernel: patch_embeddings_forward.1
= control target key start
LH: loop header
LB: loop body
LE: loop exit
PB: predicated region body
PF: predicated region fallthrough
CT: control target
= control target key end

     0   :  { %8 = vsyncpa [#allocation3], 0  ;;  %s611_s0 = inlined_call_operand.vmem [shape: bf16[32,128], index: 0, kind: input, shape index: {}]   ;;  %s612_s1 = inlined_call_operand.vmem [shape: bf16[128,32], index: 1, kind: input, shape index: {}]   ;;  %s613_s2 = inlined_call_operand.vmem [shape: f32[1,32], index: 2, kind: input, shape index: {}]   ;;  %s614_s3 = inlined_call_operand.hbm [shape: f32[32,32], index: 3, kind: output, shape index: {}]  }
   0x1   :  { %10 = vsyncpa [#allocation3 + $0x1], 0  ;;  %s499_s12 = smov 0   ;;  %s501_s13 = smov 0  }
   0x2   :  { %s503_s14 = smov 0   ;;  %s505_s15 = smov 0  }
   0x3 LB: > { %s520_s16 = sadd.s32 4294967295, %s477_s15   ;;  %s325_s17 = sadd.s32 4294967294, %s477_s15   ;;  %s477_s15 = sphi %s505_s15, %s620_s15   ;;  %s473_s14 = sphi %s503_s14, %s619_s14   ;;  %s469_s13 = sphi %s501_s13, %s618_s13   ;;  %s465_s12 = sphi %s499_s12, %s617_s12  }
   0x4   : > { %s524_s18 = sadd.s32 1, %s477_s15   ;;  %s91_s19 = sadd.s32 1, %s473_s14 }
   0x5   : > { %s88_s20 = ssub.s32 %s477_s15, %s524_s18  ;;  %p101_p0 = scmp.ne.s32.totalorder %s473_s14, %s469_s13 }
   0x6   : > { %p89_p1 = scmp.eq.s32.totalorder %s88_s20, 0  ;;  %p102_p2 = scmp.eq.s32.totalorder %s520_s16, 3 }
   0x7   : > { %p107_p3 = scmp.ne.s32.totalorder %s469_s13, %s465_s12  ;;  %p108_p4 = scmp.eq.s32.totalorder %s325_s17, 3 }
   0x8   : > { %s535_s21 = scalar_select %p89_p1, %s473_s14, %s91_s19  }
   0x9   : > { %p537_p5 = por %p102_p2, %p101_p0  ;;  %p541_p6 = por %p108_p4, %p107_p3 }
   0xa   : > { %p328_p7 = scmp.ge.s32.totalorder %s477_s15, 1  ;;  %p139_p8 = scmp.lt.s32.totalorder %s477_s15, 5 }
   0xc   : > { %p140_p9 = pnand %p328_p7, %p139_p8 }
   0xd   : > { %p162_p10 = scmp.lt.s32.totalorder (!%p140_p9), %s520_s16, 3  ;;  %s159_s27 = sand.u32 (!%p140_p9), 1, %s469_s13  }
   0xe   : > { %143 = sbr.rel (%p140_p9) target bundleno = 185 (0xb9), region = 32  ;;  %s364_s28 = sshll.u32 (!%p140_p9), %s520_s16, 3 }
   0xf   : > { %s329_s29 = sshll.u32 (!%p140_p9), %s159_s27, 3  ;;  %s261_s5 = scalar_lea.hbm (!%p140_p9), %s614_s3, %s364_s28 }
  0x10   : > { %s161_s8 = scalar_lea.vmem (!%p140_p9), [#allocation2], %s329_s29  ;;  %s265_s10 = sshll.u32 (!%p140_p9), %s261_s5, 4  ;;  %s266_s10 = int_to_ptr.hbm [resolvable:$true] %s265_s10 }
  0x11   : > { %s429_s11 = sshra.s32 (!%p140_p9), %s266_s10, 4  ;;  %s435_s24 = scalar_lea.hbm (!%p140_p9), %s614_s3, 32  ;;  %s430_s11 = int_to_ptr.hbm [resolvable:$true] %s429_s11 }
  0x12   : > { %p436_p0 = scmp.lt.s32.totalorder (!%p140_p9), %s430_s11, %s614_s3 }
  0x13   : > { %v374_v0 = vld [vmem:[%s612_s1 + $0x38] sm:$0xff]  ;;  %v373_v1 = vld [vmem:[%s612_s1 + $0x30] sm:$0xff]  ;;  %v372_v2 = vld [vmem:[%s612_s1 + $0x28] sm:$0xff]  ;;  %s163_s9 = scalar_select %p162_p10, %s520_s16, 3  ;;  %vm248_vm0 = vcmask 261120  }
  0x14   : > { %235 = vmatpush.bf16.msra.mxu0 %v374_v0  ;;  %v371_v3 = vld [vmem:[%s612_s1 + $0x20] sm:$0xff]  ;;  %v370_v4 = vld [vmem:[%s612_s1 + $0x18] sm:$0xff]  ;;  %v369_v5 = vld [vmem:[%s612_s1 + $0x10] sm:$0xff]  ;;  %s251_s16 = scalar_lea.sflag [#allocation3], %s159_s27 }
  0x15   : > { %v368_v6 = vld [vmem:[%s612_s1 + $0x8] sm:$0xff]  ;;  %s330_s17 = sshll.u32 %s163_s9, 2  ;;  %v367_v7 = vld [vmem:[%s612_s1] sm:$0xff]  ;;  %s263_s9 = sshll.u32 %s161_s8, 4  ;;  %s264_s9 = int_to_ptr.vmem [resolvable:$true] %s263_s9 }
  0x16   : > { %s165_s26 = scalar_lea.vmem %s611_s0, %s330_s17  ;;  %v414_v9 = vld [vmem:[%s613_s2] ss:$0 sm:$0xff]  ;;  %s431_s17 = scalar_lea.hbm %s430_s11, 8 }
  0x17   : > { %v166_v8 = vld [vmem:[%s165_s26] sm:$0xf]  ;;  %p432_p11 = scmp.ne.s32.totalorder %s430_s11, %s431_s17  ;;  %p437_p1 = scmp.lt.s32.totalorder %s435_s24, %s431_s17 }
  0x18   : > { %236 = vmatpush.bf16.msra.mxu0 %v373_v1 }
  0x19   : > { %p433_p12 = pnand %p432_p11, %p537_p5  ;;  %p438_p2 = por %p437_p1, %p436_p0 }
  0x1b   : > { %p434_p13 = pneg %p433_p12 }
  0x1c   : > { %237 = vmatpush.bf16.msra.mxu0 %v372_v2 }
  0x1d   : > { %p439_p3 = pnand %p438_p2, %p434_p13 }
  0x20   : > { %238 = vmatpush.bf16.msra.mxu0 %v371_v3 }
  0x24   : > { %239 = vmatpush.bf16.msra.mxu0 %v370_v4 }
  0x28   : > { %240 = vmatpush.bf16.msra.mxu0 %v369_v5 }
  0x2c   : > { %241 = vmatpush.bf16.msra.mxu0 %v368_v6 }
  0x30   : > { %242 = vmatpush.bf16.msra.mxu0 %v367_v7 }
  0x33   : > { %243 = vmatmul.bf16.vlgmr.msra.gmra.mxu0 %v166_v8 }
  0xb0   : > { %v244_v10 = vpop.f32.mrf.mxu0 }
  0xb1   : > { %v245_v11 = vadd.f32 %v414_v9, %v244_v10 }
  0xb3   : > { %249 = vst.msk [vmem:[%s161_s8] sm:$0xff] %vm248_vm0, %v245_v11 }
  0xb4   : > { %442 = shalt.err (!%p439_p3)
}
  0xb5   : > { %375 = dma.vmem_to_hbm [thread:$0]  (%p537_p5), %s264_s9, 128, %s266_s10, %s251_s16  }
  0xb8   : > { %v246_v12 = vpop.f32.mrf.mxu0 }
  0xb9 PF: > { %p381_p4 = scmp.ge.s32.totalorder %s477_s15, 2  ;;  %s277_s27 = sand.u32 1, %s465_s12  }
  0xba   : > { %s278_s28 = scalar_lea.sflag [#allocation3], %s277_s27 }
  0xbb   : > { %p378_p7 = pnand %p381_p4, %p541_p6 }
  0xbd   : > { %p379_p8 = pneg %p378_p7 }
  0xbf   : > { %460 = dma.done.wait (%p379_p8), %s278_s28, 128  }
  0xc0   : > { %462 = vsyncadd (%p379_p8), %s278_s28, 4294967168  ;;  %p13_p9 = scmp.ge.s32.totalorder %s524_s18, 6   ;;  %s617_s12 = smov %s469_s13 }
  0xc1   : > { %s618_s13 = smov %s473_s14  ;;  %s619_s14 = smov %s535_s21 }
  0xc2   : > { %s620_s15 = smov %s524_s18  ;;  %15 = sbr.rel (!%p13_p9) target bundleno = 3 (0x3), region = 67 }
  0xc7   :  { %284 = vsyncpa [#allocation3], 1 }
  0xc8   :  { %286 = vsyncpa [#allocation3 + $0x1], 1 }

</bundles_post_ra>
